<compile_context>
chip_gen: v6e
topology: v6e:2x2x1
jax: 0.10.0
libtpu: 0.0.40
codegen_flags: <defaults>
</compile_context>

<pallas_src>
import functools
import math

import jax
import jax.numpy as jnp
from jax.experimental import pallas as pl
from jax.experimental.pallas import tpu as pltpu

_NEG_BIG = -1e30  # finite "minus infinity": avoids NaN on fully-masked rows
_MIB = 1024 * 1024


# ----------------------------- chip introspection -----------------------------

def _device_kind():
    try:
        return jax.devices()[0].device_kind.lower()
    except Exception:
        return ""


def _vmem_capacity_bytes():
    """Physical VMEM per TensorCore, or None if it cannot be determined."""
    try:
        cap = int(pltpu.get_tpu_info().vmem_capacity_bytes)
        if cap > 0:
            return cap
    except Exception:
        pass
    kind = _device_kind()
    if "v7" in kind:
        return 64 * _MIB
    if "v6" in kind or "v5" in kind or "v4" in kind:
        return 128 * _MIB
    return None


# ----------------------------- tiling -----------------------------

def _pick_q_tile(lq, lk, d, dv, in_item, attn_item, ctx_item, mask_item, budget):
    """VMEM-aware query tile; returns (tq, padded_lq)."""
    if lq <= 128:
        return lq, lq  # single full-Lq block (block dim == array dim is always legal)

    def footprint(t):
        io = 2 * t * d * in_item                    # Q, double-buffered
        io += 2 * lk * (d + dv) * in_item           # resident K + V, double-buffered
        io += 2 * t * dv * ctx_item                 # ctx writeback
        io += 2 * t * lk * attn_item                # attn writeback (dominant HBM traffic)
        io += 2 * t * lk * mask_item                # mask / bias (0 if no mask)
        return io + 3 * t * lk * 4                  # f32 score/exp temporaries

    tq = 128                                        # minimum lane/sublane-friendly tile
    for t in (512, 256, 128):
        if footprint(t) <= budget:
            tq = t
            break
    tq = min(tq, -(-lq // 128) * 128)               # don't overshoot Lq by more than one tile
    lq_pad = -(-lq // tq) * tq
    return tq, lq_pad


# ----------------------------- kernels -----------------------------

def _attn_body(q, k, v, mask, ctx_ref, attn_ref, *, scale, mask_mode, exp_dtype, mxu_dtype):
    if mxu_dtype is not None:
        q = q.astype(mxu_dtype)
        k = k.astype(mxu_dtype)
    # Fold 1/sqrt(d) into the (tq, D) query tile (cheaper than scaling (tq, Lk) scores).
    q = q * jnp.asarray(scale, q.dtype)
    # QK^T without materializing a transpose: contract the last dims on the MXU.
    score = jax.lax.dot_general(
        q, k, (((1,), (1,)), ((), ())), preferred_element_type=jnp.float32)  # (tq, Lk) f32
    if mask_mode == "bias":
        score = score + mask.astype(jnp.float32)             # one VALU add
    elif mask_mode == "int8":
        score = jnp.where(mask == 0, jnp.float32(_NEG_BIG), score)
    m = jnp.max(score, axis=-1, keepdims=True)
    e = jnp.exp((score - m).astype(exp_dtype))               # EUP; bf16 on v6e/v7x for bf16 inputs
    s = jnp.sum(e.astype(jnp.float32), axis=-1, keepdims=True)
    inv_s = pl.reciprocal(s, approx=True)                    # EUP slot, ~free
    pv_dtype = mxu_dtype if mxu_dtype is not None else v.dtype
    ctx = jnp.dot(e.astype(pv_dtype), v.astype(pv_dtype), preferred_element_type=jnp.float32)
    # Normalize AFTER the PV matmul: only (tq, Dv) multiplies on the ctx critical path.
    ctx_ref[...] = (ctx * inv_s).astype(ctx_ref.dtype)
    attn_ref[...] = (e * inv_s.astype(e.dtype)).astype(attn_ref.dtype)


def _attn_kernel(q_ref, k_ref, v_ref, ctx_ref, attn_ref, *, scale, exp_dtype, mxu_dtype):
    _attn_body(q_ref[...], k_ref[...], v_ref[...], None, ctx_ref, attn_ref,
               scale=scale, mask_mode=None, exp_dtype=exp_dtype, mxu_dtype=mxu_dtype)


def _attn_kernel_masked(q_ref, k_ref, v_ref, m_ref, ctx_ref, attn_ref, *,
                        scale, mask_mode, exp_dtype, mxu_dtype):
    _attn_body(q_ref[...], k_ref[...], v_ref[...], m_ref[...], ctx_ref, attn_ref,
               scale=scale, mask_mode=mask_mode, exp_dtype=exp_dtype, mxu_dtype=mxu_dtype)


# ----------------------------- wrapper -----------------------------

def attention(query, key, value, mask=None, *, mxu_dtype=None, mask_as_bias=None):
    """Pallas equivalent of Attention.forward. Returns (context, attn).

    mxu_dtype:    optional dtype for the MXU inputs (e.g. jnp.bfloat16 for f32 callers on
                  v5e); accumulation stays f32. Default None = use native input dtype.
    mask_as_bias: True -> mask enters as an additive bf16 bias (VALU-cheap, more DMA);
                  False -> int8 compare+select (DMA-cheap). Default: chip-dependent.
    """
    q_dim = query.shape[-1]
    k_dim = key.shape[-1]
    assert q_dim == k_dim
    lead = query.shape[:-2]
    Lq = query.shape[-2]
    Lk = key.shape[-2]
    Dv = value.shape[-1]
    B = 1
    for s in lead:
        B *= s

    q = query.reshape(B, Lq, q_dim)
    k = key.reshape(B, Lk, k_dim)
    v = value.reshape(B, Lk, Dv)

    attn_dtype = jnp.result_type(query.dtype, key.dtype)
    ctx_dtype = jnp.result_type(attn_dtype, value.dtype)

    kind = _device_kind()
    vmem_cap = _vmem_capacity_bytes()
    # ~100 MiB of 128 MiB (v5e/v6e), ~50 MiB of 64 MiB (v7x); default scoped limit otherwise.
    vmem_limit = int(vmem_cap * 0.78) if vmem_cap else 32 * _MIB

    if mask_as_bias is None:
        mask_as_bias = "v7" in kind   # VALU/EUP-bound on v7x -> bias; keep int8 (less DMA) elsewhere
    exp_dtype = (jnp.bfloat16
                 if (attn_dtype == jnp.bfloat16 and ("v6" in kind or "v7" in kind))
                 else jnp.float32)    # no bf16 EUP on v5e

    in_item = max(jnp.dtype(query.dtype).itemsize, jnp.dtype(key.dtype).itemsize,
                  jnp.dtype(value.dtype).itemsize)
    mask_item = 0 if mask is None else (2 if mask_as_bias else 1)
    tq, Lq_pad = _pick_q_tile(
        Lq, Lk, q_dim, Dv, in_item,
        jnp.dtype(attn_dtype).itemsize, jnp.dtype(ctx_dtype).itemsize,
        mask_item, int(vmem_limit * 0.85))
    n_q = Lq_pad // tq
    if Lq_pad != Lq:
        q = jnp.pad(q, ((0, 0), (0, Lq_pad - Lq), (0, 0)))
    scale = 1.0 / math.sqrt(q_dim)

    # ---- mask preparation (broadcast-aware, compact dtype) ----
    mask_bytes = 0
    if mask is not None:
        m_bool = (mask != 0)
        m_bool = jnp.broadcast_to(m_bool, m_bool.shape[:-2] + (Lq, Lk))
        m_lead = m_bool.shape[:-2]
        MB = 1
        for s in m_lead:
            MB *= s
        if MB == 1:
            m_bool = m_bool.reshape(1, Lq, Lk)
            m_index = lambda b, i: (0, i, 0)        # broadcast: reuse block 0, no B-way copy
        elif m_lead == lead:
            m_bool = m_bool.reshape(B, Lq, Lk)
            m_index = lambda b, i: (b, i, 0)
        else:
            m_bool = jnp.broadcast_to(m_bool, lead + (Lq, Lk)).reshape(B, Lq, Lk)
            m_index = lambda b, i: (b, i, 0)
        if mask_as_bias:
            m_arr = jnp.where(m_bool, jnp.float32(0.0),
                              jnp.float32(_NEG_BIG)).astype(jnp.bfloat16)
            pad_fill = 0
        else:
            m_arr = m_bool.astype(jnp.int8)
            pad_fill = 1
        if Lq_pad != Lq:
            m_arr = jnp.pad(m_arr, ((0, 0), (0, Lq_pad - Lq), (0, 0)),
                            constant_values=pad_fill)
        m_spec = pl.BlockSpec((None, tq, Lk), m_index)
        mask_bytes = m_arr.size * m_arr.dtype.itemsize

    # ---- specs ----
    out_shape = (
        jax.ShapeDtypeStruct((B, Lq_pad, Dv), ctx_dtype),    # context
        jax.ShapeDtypeStruct((B, Lq_pad, Lk), attn_dtype),   # attn
    )
    out_specs = (
        pl.BlockSpec((None, tq, Dv), lambda b, i: (b, i, 0)),
        pl.BlockSpec((None, tq, Lk), lambda b, i: (b, i, 0)),
    )
    q_spec = pl.BlockSpec((None, tq, q_dim), lambda b, i: (b, i, 0))
    k_spec = pl.BlockSpec((None, Lk, k_dim), lambda b, i: (b, 0, 0))
    v_spec = pl.BlockSpec((None, Lk, Dv), lambda b, i: (b, 0, 0))

    # Advisory cost estimate (mask bytes and true itemsizes included).
    cost = pl.CostEstimate(
        flops=2 * B * Lq_pad * Lk * (q_dim + Dv),
        transcendentals=B * Lq_pad * Lk,
        bytes_accessed=int(
            q.size * q.dtype.itemsize + k.size * k.dtype.itemsize + v.size * v.dtype.itemsize
            + mask_bytes
            + B * Lq_pad * Dv * jnp.dtype(ctx_dtype).itemsize
            + B * Lq_pad * Lk * jnp.dtype(attn_dtype).itemsize),
    )
    cparams = pltpu.CompilerParams(
        dimension_semantics=("parallel", "parallel"),
        vmem_limit_bytes=vmem_limit if vmem_cap else None,
    )

    if mask is None:
        kern = functools.partial(_attn_kernel, scale=scale,
                                 exp_dtype=exp_dtype, mxu_dtype=mxu_dtype)
        in_specs = [q_spec, k_spec, v_spec]
        args = (q, k, v)
    else:
        kern = functools.partial(_attn_kernel_masked, scale=scale,
                                 mask_mode=("bias" if mask_as_bias else "int8"),
                                 exp_dtype=exp_dtype, mxu_dtype=mxu_dtype)
        in_specs = [q_spec, k_spec, v_spec, m_spec]
        args = (q, k, v, m_arr)

    ctx, attn = pl.pallas_call(
        kern,
        out_shape=out_shape,
        grid_spec=pltpu.PrefetchScalarGridSpec(
            num_scalar_prefetch=0,
            grid=(B, n_q),
            in_specs=in_specs,
            out_specs=out_specs,
        ),
        compiler_params=cparams,
        cost_estimate=cost,
    )(*args)

    ctx = ctx[:, :Lq].reshape(lead + (Lq, Dv))
    attn = attn[:, :Lq].reshape(lead + (Lq, Lk))
    return ctx, attn


# ----------------------------- self-test -----------------------------

if __name__ == "__main__":
    key0 = jax.random.PRNGKey(0)
    kq, kk, kv, km, kp = jax.random.split(key0, 5)

    # small shapes: batch=2, heads=2, q_len=8, k_len=8, dim=16, v_dim=16
    B, H, Lq, Lk, D, Dv = 2, 2, 8, 8, 16, 16
    query = jax.random.normal(kq, (B, H, Lq, D), dtype=jnp.float32)
    key_t = jax.random.normal(kk, (B, H, Lk, D), dtype=jnp.float32)
    value = jax.random.normal(kv, (B, H, Lk, Dv), dtype=jnp.float32)
    # random 0/1 mask; guarantee at least one unmasked key per query row (diag = 1)
    mask = (jax.random.uniform(km, (B, H, Lq, Lk)) > 0.3).astype(jnp.int32)
    mask = jnp.maximum(mask, jnp.eye(Lq, Lk, dtype=jnp.int32)[None, None])
    # broadcastable mask (shared across batch & heads) to exercise the no-materialize path
    mask_bc = jnp.maximum(
        (jax.random.uniform(km, (Lq, Lk)) > 0.3).astype(jnp.int32),
        jnp.eye(Lq, Lk, dtype=jnp.int32))

    # pure-JAX reference
    def ref(q, k, v, m=None):
        score = jnp.einsum("bhqd,bhkd->bhqk", q, k) / math.sqrt(q.shape[-1])
        if m is not None:
            score = jnp.where(m == 0, -jnp.inf, score)
        a = jax.nn.softmax(score, axis=-1)
        return jnp.einsum("bhqk,bhkd->bhqd", a, v), a

    TOL = dict(atol=5e-3, rtol=5e-3)   # approx reciprocal introduces ~1e-3-level error

    ctx0, attn0 = attention(query, key_t, value)
    ctx1a, attn1a = attention(query, key_t, value, mask, mask_as_bias=False)  # int8 path
    ctx1b, attn1b = attention(query, key_t, value, mask, mask_as_bias=True)   # bias path
    ctx2, attn2 = attention(query, key_t, value, mask_bc)
    ctx3, attn3 = attention(query, key_t, value, mxu_dtype=jnp.bfloat16)      # bf16-MXU flag
    jax.block_until_ready((ctx0, attn0, ctx1a, attn1a, ctx1b, attn1b, ctx2, attn2, ctx3, attn3))

    rc0, ra0 = ref(query, key_t, value)
    rc1, ra1 = ref(query, key_t, value, mask)
    rc2, ra2 = ref(query, key_t, value, mask_bc[None, None])
    assert jnp.allclose(ctx0, rc0, **TOL), "context (no mask) mismatch"
    assert jnp.allclose(attn0, ra0, **TOL), "attn (no mask) mismatch"
    assert jnp.allclose(ctx1a, rc1, **TOL), "context (int8 mask) mismatch"
    assert jnp.allclose(attn1a, ra1, **TOL), "attn (int8 mask) mismatch"
    assert jnp.allclose(ctx1b, rc1, **TOL), "context (bias mask) mismatch"
    assert jnp.allclose(attn1b, ra1, **TOL), "attn (bias mask) mismatch"
    assert jnp.allclose(ctx2, rc2, **TOL), "context (bcast mask) mismatch"
    assert jnp.allclose(attn2, ra2, **TOL), "attn (bcast mask) mismatch"
    assert jnp.allclose(ctx3, rc0, atol=5e-2, rtol=5e-2), "context (bf16 MXU) mismatch"
    assert jnp.allclose(attn3, ra0, atol=5e-2, rtol=5e-2), "attn (bf16 MXU) mismatch"

    # non-divisible Lq exercises the padded-tile path (Lq=200 -> tq=256, one padded tile)
    Lq2, Lk2, D2 = 200, 128, 32
    q2 = jax.random.normal(kp, (1, 2, Lq2, D2), dtype=jnp.float32)
    k2 = jax.random.normal(kk, (1, 2, Lk2, D2), dtype=jnp.float32)
    v2 = jax.random.normal(kv, (1, 2, Lk2, D2), dtype=jnp.float32)
    ctx4, attn4 = attention(q2, k2, v2)
    jax.block_until_ready((ctx4, attn4))
    rc4, ra4 = ref(q2, k2, v2)
    assert jnp.allclose(ctx4, rc4, **TOL), "context (padded Lq) mismatch"
    assert jnp.allclose(attn4, ra4, **TOL), "attn (padded Lq) mismatch"

    print("KERNEL_OK")
</pallas_src>

<mosaic_0001>
module attributes {stable_mosaic.version = 11 : i64} {
  func.func @_attn_kernel(%arg0: i32, %arg1: i32, %arg2: memref<1x8x16xf32, #tpu.memory_space<vmem>>, %arg3: memref<1x8x16xf32, #tpu.memory_space<vmem>>, %arg4: memref<1x8x16xf32, #tpu.memory_space<vmem>>, %arg5: memref<1x8x16xf32, #tpu.memory_space<vmem>>, %arg6: memref<1x8x8xf32, #tpu.memory_space<vmem>>) attributes {dimension_semantics = [#tpu.dimension_semantics<parallel>, #tpu.dimension_semantics<parallel>], iteration_bounds = array<i64: 4, 1>, scalar_prefetch = 0 : i64, scratch_operands = 0 : i64, tpu.core_type = #tpu.core_type<tc>, window_params = [{transform_indices = @transform_0, window_bounds = array<i64: 1, 8, 16>}, {transform_indices = @transform_1, window_bounds = array<i64: 1, 8, 16>}, {transform_indices = @transform_2, window_bounds = array<i64: 1, 8, 16>}, {transform_indices = @transform_3, window_bounds = array<i64: 1, 8, 16>}, {transform_indices = @transform_4, window_bounds = array<i64: 1, 8, 8>}]} {
    %c0 = arith.constant 0 : index
    %c0_0 = arith.constant 0 : index
    %c0_1 = arith.constant 0 : index
    %0 = vector.load %arg2[%c0, %c0_0, %c0_1] : memref<1x8x16xf32, #tpu.memory_space<vmem>>, vector<1x8x16xf32>
    %1 = vector.shape_cast %0 : vector<1x8x16xf32> to vector<8x16xf32>
    %c0_2 = arith.constant 0 : index
    %c0_3 = arith.constant 0 : index
    %c0_4 = arith.constant 0 : index
    %2 = vector.load %arg3[%c0_2, %c0_3, %c0_4] : memref<1x8x16xf32, #tpu.memory_space<vmem>>, vector<1x8x16xf32>
    %3 = vector.shape_cast %2 : vector<1x8x16xf32> to vector<8x16xf32>
    %c0_5 = arith.constant 0 : index
    %c0_6 = arith.constant 0 : index
    %c0_7 = arith.constant 0 : index
    %4 = vector.load %arg4[%c0_5, %c0_6, %c0_7] : memref<1x8x16xf32, #tpu.memory_space<vmem>>, vector<1x8x16xf32>
    %5 = vector.shape_cast %4 : vector<1x8x16xf32> to vector<8x16xf32>
    %cst = arith.constant 2.500000e-01 : f32
    %6 = vector.broadcast %cst : f32 to vector<8x16xf32>
    %7 = arith.mulf %1, %6 : vector<8x16xf32>
    %cst_8 = arith.constant dense<0.000000e+00> : vector<8x8xf32>
    %8 = tpu.matmul %7, %3, %cst_8 {dimension_numbers = #tpu.dot_dimension_numbers<[1], [1], [0], [0], [0, 0, 1, 0], [], []>} : vector<8x16xf32>, vector<8x16xf32>, vector<8x8xf32> -> vector<8x8xf32>
    %cst_9 = arith.constant dense<0xFF800000> : vector<8xf32>
    %9 = vector.multi_reduction <maximumf>, %8, %cst_9 [1] : vector<8x8xf32> to vector<8xf32>
    %10 = vector.shape_cast %9 : vector<8xf32> to vector<8x1xf32>
    %11 = vector.broadcast %10 : vector<8x1xf32> to vector<8x8xf32>
    %12 = arith.subf %8, %11 : vector<8x8xf32>
    %13 = math.exp %12 : vector<8x8xf32>
    %cst_10 = arith.constant dense<0.000000e+00> : vector<8xf32>
    %14 = vector.multi_reduction <add>, %13, %cst_10 [1] : vector<8x8xf32> to vector<8xf32>
    %15 = vector.shape_cast %14 : vector<8xf32> to vector<8x1xf32>
    %16 = tpu.reciprocal %15 {approx = true} : vector<8x1xf32> -> vector<8x1xf32>
    %cst_11 = arith.constant dense<0.000000e+00> : vector<8x16xf32>
    %17 = tpu.matmul %13, %5, %cst_11 {dimension_numbers = #tpu.dot_dimension_numbers<[1], [0], [0], [1], [0, 0, 1, 1], [], []>} : vector<8x8xf32>, vector<8x16xf32>, vector<8x16xf32> -> vector<8x16xf32>
    %18 = vector.broadcast %16 : vector<8x1xf32> to vector<8x16xf32>
    %19 = arith.mulf %17, %18 : vector<8x16xf32>
    %c0_12 = arith.constant 0 : index
    %c0_13 = arith.constant 0 : index
    %c0_14 = arith.constant 0 : index
    %20 = vector.load %arg5[%c0_12, %c0_13, %c0_14] : memref<1x8x16xf32, #tpu.memory_space<vmem>>, vector<1x8x16xf32>
    %21 = vector.shape_cast %20 : vector<1x8x16xf32> to vector<8x16xf32>
    %22 = vector.shape_cast %19 : vector<8x16xf32> to vector<1x8x16xf32>
    tpu.vector_store %arg5[%c0_12, %c0_13, %c0_14], %22 {strides = array<i32>} : memref<1x8x16xf32, #tpu.memory_space<vmem>>, vector<1x8x16xf32>,
    %23 = vector.broadcast %16 : vector<8x1xf32> to vector<8x8xf32>
    %24 = arith.mulf %13, %23 : vector<8x8xf32>
    %c0_15 = arith.constant 0 : index
    %c0_16 = arith.constant 0 : index
    %c0_17 = arith.constant 0 : index
    %25 = vector.load %arg6[%c0_15, %c0_16, %c0_17] : memref<1x8x8xf32, #tpu.memory_space<vmem>>, vector<1x8x8xf32>
    %26 = vector.shape_cast %25 : vector<1x8x8xf32> to vector<8x8xf32>
    %27 = vector.shape_cast %24 : vector<8x8xf32> to vector<1x8x8xf32>
    tpu.vector_store %arg6[%c0_15, %c0_16, %c0_17], %27 {strides = array<i32>} : memref<1x8x8xf32, #tpu.memory_space<vmem>>, vector<1x8x8xf32>,
    return
  }
  func.func @transform_0(%arg0: i32, %arg1: i32) -> (i32, i32, i32) {
    %c0_i32 = arith.constant 0 : i32
    %c0_i32_0 = arith.constant 0 : i32
    return %arg0, %arg1, %c0_i32 : i32, i32, i32
  }
  func.func @transform_1(%arg0: i32, %arg1: i32) -> (i32, i32, i32) {
    %c0_i32 = arith.constant 0 : i32
    %c0_i32_0 = arith.constant 0 : i32
    %c0_i32_1 = arith.constant 0 : i32
    return %arg0, %c0_i32, %c0_i32_0 : i32, i32, i32
  }
  func.func @transform_2(%arg0: i32, %arg1: i32) -> (i32, i32, i32) {
    %c0_i32 = arith.constant 0 : i32
    %c0_i32_0 = arith.constant 0 : i32
    %c0_i32_1 = arith.constant 0 : i32
    return %arg0, %c0_i32, %c0_i32_0 : i32, i32, i32
  }
  func.func @transform_3(%arg0: i32, %arg1: i32) -> (i32, i32, i32) {
    %c0_i32 = arith.constant 0 : i32
    %c0_i32_0 = arith.constant 0 : i32
    return %arg0, %arg1, %c0_i32 : i32, i32, i32
  }
  func.func @transform_4(%arg0: i32, %arg1: i32) -> (i32, i32, i32) {
    %c0_i32 = arith.constant 0 : i32
    %c0_i32_0 = arith.constant 0 : i32
    return %arg0, %arg1, %c0_i32 : i32, i32, i32
  }
}

</mosaic_0001>

<bundles_post_ra>
// kernel: tpu_custom_call.1
= control target key start
LH: loop header
LB: loop body
LE: loop exit
PB: predicated region body
PF: predicated region fallthrough
CT: control target
= control target key end

     0   :  { %s1257_s0 = inlined_call_operand.hbm [shape: f32[4,8,16], index: 0, kind: input, shape index: {}]   ;;  %s1258_s1 = inlined_call_operand.hbm [shape: f32[4,8,16], index: 1, kind: input, shape index: {}]   ;;  %s1259_s2 = inlined_call_operand.hbm [shape: f32[4,8,16], index: 2, kind: input, shape index: {}]   ;;  %s1260_s3 = inlined_call_operand.hbm [shape: f32[4,8,16], index: 3, kind: output, shape index: {0}]   ;;  %s1261_s4 = inlined_call_operand.hbm [shape: f32[4,8,8], index: 4, kind: output, shape index: {1}]  }
   0x1   :  { %1265 = sst [smem:[#allocation18_spill]] %s1258_s1 }
   0x2   :  { %10 = vsyncpa [#allocation3], 0 }
   0x3   :  { %12 = vsyncpa [#allocation3 + $0x1], 0 }
   0x4   :  { %13 = vsyncpa [#allocation6], 0 }
   0x5   :  { %15 = vsyncpa [#allocation6 + $0x1], 0 }
   0x6   :  { %16 = vsyncpa [#allocation4], 0 }
   0x7   :  { %18 = vsyncpa [#allocation4 + $0x1], 0 }
   0x8   :  { %19 = vsyncpa [#allocation10], 0 }
   0x9   :  { %21 = vsyncpa [#allocation10 + $0x1], 0  ;;  %s1027_s15 = smov 0   ;;  %s1029_s16 = smov 0  }
   0xa   :  { %s1031_s17 = smov 0   ;;  %s1033_s18 = smov 0  }
   0xb   :  { %s1035_s19 = smov 0   ;;  %s1037_s20 = smov 0  }
   0xc LB: > { %1266 = sst [smem:[#allocation15_spill]] %s989_s19  ;;  %s1058_s21 = sadd.s32 4294967295, %s993_s20   ;;  %s993_s20 = sphi %s1037_s20, %s27_s20   ;;  %s989_s19 = sphi %s1035_s19, %s1279_s19   ;;  %s985_s18 = sphi %s1033_s18, %s1278_s18   ;;  %s981_s17 = sphi %s1031_s17, %s1282_s17   ;;  %s977_s16 = sphi %s1029_s16, %s1281_s16   ;;  %s973_s15 = sphi %s1027_s15, %s1280_s15  }
   0xd   : > { %s674_s22 = sadd.s32 4294967294, %s993_s20   ;;  %s39_s23 = sadd.s32 1, %s989_s19 }
   0xe   : > { %s48_s24 = sadd.s32 1, %s981_s17  ;;  %p41_p0 = scmp.ge.s32.totalorder %s39_s23, 4 }
   0xf   : > { %p55_p1 = scmp.ne.s32.totalorder %s981_s17, %s977_s16  ;;  %p56_p2 = scmp.eq.s32.totalorder %s993_s20, 0 }
  0x10   : > { %p61_p3 = scmp.ne.s32.totalorder %s977_s16, %s973_s15  ;;  %s1284_s23 = smov (%p41_p0, %s39_s23), 0 }
  0x11   : > { %1267 = sst [smem:[#allocation16_spill]] %s1284_s23  ;;  %p1070_p4 = por %p56_p2, %p55_p1 }
  0x12   : > { %p62_p5 = scmp.eq.s32.totalorder %s1058_s21, 0  ;;  %s43_s26 = ssub.s32 %s989_s19, %s1284_s23 }
  0x13   : > { %p139_p6 = scmp.eq.s32.totalorder %s1058_s21, 3  ;;  %p46_p7 = scmp.eq.s32.totalorder %s43_s26, 0 }
  0x14   : > { %p1078_p8 = por %p62_p5, %p61_p3  ;;  %p145_p10 = scmp.eq.s32.totalorder %s674_s22, 3 }
  0x15   : > { %p1082_p9 = por %p139_p6, %p55_p1  ;;  %p739_p12 = scmp.lt.s32.totalorder %s993_s20, 4 }
  0x16   : > { %s1087_s29 = scalar_select %p46_p7, %s981_s17, %s48_s24  }
  0x17   : > { %p1089_p11 = por %p145_p10, %p61_p3  ;;  %s1262_s5 = sand.u32 1, %s981_s17  }
  0x18   : > { %1271 = sst [smem:[#allocation17_spill]] %s1087_s29  ;;  %s1097_s6 = sshll.u32 %s1262_s5, 3 }
  0x19   : > { %s1100_s7 = sshll.u32 %s989_s19, 7  ;;  %p1104_p13 = pnand %p739_p12, %p1070_p4 }
  0x1a   : > { %s212_s9 = sand.u32 1, %s993_s20   ;;  %s1274_s1 = sld [smem:[#allocation18_spill]] }
  0x1b   : > { %s216_s13 = scalar_lea.vmem [#allocation5], %s1097_s6  ;;  %p683_p0 = scmp.ge.s32.totalorder %s993_s20, 1 }
  0x1c   : > { %s223_s14 = sshll.u32 %s216_s13, 4  ;;  %p246_p1 = scmp.lt.s32.totalorder %s993_s20, 5  ;;  %s224_s14 = int_to_ptr.vmem [resolvable:$true] %s223_s14 }
  0x1d   : > { %s1116_s22 = scalar_lea.sflag [#allocation6], %s212_s9  ;;  %p797_p2 = pneg %p1104_p13 }
  0x1e   : > { %s808_s24 = scalar_lea.vmem %s224_s14, 128  ;;  %s995_s25 = smov [#allocation5]  }
  0x1f   : > { %p809_p3 = scmp.ne.s32.totalorder %s224_s14, %s808_s24  ;;  %s813_s26 = sshll.u32 %s995_s25, 4  ;;  %s814_s26 = int_to_ptr.vmem [resolvable:$false] %s813_s26 }
  0x20   : > { %s221_s12 = scalar_lea.hbm %s1274_s1, %s1100_s7  ;;  %s815_s10 = scalar_lea.vmem %s814_s26, 256 }
  0x21   : > { %p811_p4 = pnand %p809_p3, %p797_p2  ;;  %p816_p6 = scmp.lt.s32.totalorder %s224_s14, %s814_s26 }
  0x22   : > { %p817_p7 = scmp.lt.s32.totalorder %s815_s10, %s808_s24 }
  0x23   : > { %p812_p5 = pneg %p811_p4 }
  0x24   : > { %p818_p10 = por %p817_p7, %p816_p6 }
  0x26   : > { %p819_p12 = pnand %p818_p10, %p812_p5 }
  0x28   : > { %822 = shalt.err (!%p819_p12)
}
  0x29   : > { %728 = dma.hbm_to_vmem [thread:$0]  (!%p1104_p13), %s221_s12, 128, %s224_s14, %s1116_s22  }
  0x2a   : > { %p1130_p3 = pnand %p683_p0, %p246_p1  ;;  %s203_s24 = scalar_lea.hbm %s1257_s0, %s1100_s7 }
  0x2b   : > { %s197_s25 = scalar_lea.vmem [#allocation2], %s1097_s6  ;;  %s239_s1 = scalar_lea.hbm %s1259_s2, %s1100_s7 }
  0x2c   : > { %s205_s26 = sshll.u32 %s197_s25, 4  ;;  %s1276_s23 = sand.u32 1, %s981_s17   ;;  %s206_s26 = int_to_ptr.vmem [resolvable:$true] %s205_s26 }
  0x2d   : > { %s194_s19 = scalar_lea.sflag [#allocation3], %s1276_s23  ;;  %s836_s12 = scalar_lea.vmem %s206_s26, 128 }
  0x2e   : > { %p837_p4 = scmp.ne.s32.totalorder %s206_s26, %s836_s12  ;;  %s996_s14 = smov [#allocation2]  }
  0x2f   : > { %s841_s29 = sshll.u32 %s996_s14, 4  ;;  %s842_s29 = int_to_ptr.vmem [resolvable:$false] %s841_s29 }
  0x30   : > { %p839_p0 = pnand %p837_p4, %p797_p2  ;;  %s843_s11 = scalar_lea.vmem %s842_s29, 256 }
  0x31   : > { %p844_p5 = scmp.lt.s32.totalorder %s206_s26, %s842_s29  ;;  %p845_p6 = scmp.lt.s32.totalorder %s843_s11, %s836_s12 }
  0x32   : > { %p840_p1 = pneg %p839_p0 }
  0x33   : > { %p846_p7 = por %p845_p6, %p844_p5 }
  0x35   : > { %p847_p10 = pnand %p846_p7, %p840_p1 }
  0x37   : > { %850 = shalt.err (!%p847_p10)
}
  0x38   : > { %725 = dma.hbm_to_vmem [thread:$0]  (!%p1104_p13), %s203_s24, 128, %s206_s26, %s194_s19  }
  0x39   : > { %s234_s23 = scalar_lea.vmem [#allocation7], %s1097_s6  ;;  %s997_s25 = smov [#allocation7]  }
  0x3a   : > { %s241_s5 = sshll.u32 %s234_s23, 4  ;;  %s869_s29 = sshll.u32 %s997_s25, 4  ;;  %s242_s5 = int_to_ptr.vmem [resolvable:$true] %s241_s5  ;;  %s870_s29 = int_to_ptr.vmem [resolvable:$false] %s869_s29 }
  0x3b   : > { %s864_s13 = scalar_lea.vmem %s242_s5, 128  ;;  %s871_s10 = scalar_lea.vmem %s870_s29, 256 }
  0x3c   : > { %p865_p12 = scmp.ne.s32.totalorder %s242_s5, %s864_s13  ;;  %p872_p1 = scmp.lt.s32.totalorder %s242_s5, %s870_s29 }
  0x3d   : > { %p873_p5 = scmp.lt.s32.totalorder %s871_s10, %s864_s13 }
  0x3e   : > { %p867_p4 = pnand %p865_p12, %p797_p2 }
  0x3f   : > { %p874_p6 = por %p873_p5, %p872_p1 }
  0x40   : > { %p868_p0 = pneg %p867_p4 }
  0x42   : > { %p875_p7 = pnand %p874_p6, %p868_p0 }
  0x44   : > { %878 = shalt.err (!%p875_p7)
}
  0x45   : > { %731 = dma.hbm_to_vmem [thread:$0]  (!%p1104_p13), %s239_s1, 128, %s242_s5, %s1116_s22  }
  0x46   : > { %250 = sbr.rel (%p1130_p3) target bundleno = 643 (0x283), region = 32  ;;  %s1165_s24 = sand.u32 (!%p1130_p3), 1, %s977_s16  }
  0x47   : > { %s1168_s26 = sshll.u32 (!%p1130_p3), %s1165_s24, 3  ;;  %s253_s8 = scalar_lea.sflag (!%p1130_p3), [#allocation3], %s1165_s24 }
  0x48   : > { %s256_s12 = scalar_lea.vmem (!%p1130_p3), [#allocation2], %s1168_s26 }
  0x4b   : > { %956 = dma.done.wait (%p1078_p8), %s253_s8, 128  }
  0x4c   : > { %958 = vsyncadd (%p1078_p8), %s253_s8, 4294967168  ;;  %s261_s1 = sand.u32 1, %s1058_s21   ;;  %s265_s22 = scalar_lea.vmem [#allocation5], %s1168_s26 }
  0x4d   : > { %s262_s7 = scalar_lea.sflag [#allocation6], %s261_s1 }
  0x4e   : > { %960 = dma.done.wait (%p1078_p8), %s262_s7, 256  }
  0x4f   : > { %962 = vsyncadd (%p1078_p8), %s262_s7, 4294967040  ;;  %v998_v0 = vmov 0.0   ;;  %vm999_vm0 = vmmov 0   ;;  %vm318_vm1 = vcmask 130048   ;;  %v315_v1 = vld [vmem:[%s265_s22] sm:$0xff]  ;;  %v314_v2 = vld [vmem:[%s256_s12] sm:$0xff] }
  0x50   : > { %702 = vmatprep.subr.mxu0 %v998_v0  ;;  %704 = vmatprep.mubr.msk.f32.mxu0 %vm999_vm0, %v998_v0  ;;  %v317_v3 = vmul.f32 0.25, %v314_v2  ;;  %vm395_vm2 = vcmask 64512   ;;  %s274_s21 = scalar_lea.vmem [#allocation7], %s1168_s26  ;;  %s694_s27 = sshll.u32 %s985_s18, 7 }
  0x51   : > { %707 = vmatprep.subr.mxu1 %v998_v0  ;;  %709 = vmatprep.mubr.msk.f32.mxu1 %vm999_vm0, %v998_v0  ;;  %v316_v7 = vld [vmem:[%s274_s21] sm:$0xff]  ;;  %s313_s9 = scalar_lea.vmem [#allocation9], %s1168_s26  ;;  %s515_s5 = scalar_lea.hbm %s1261_s4, %s694_s27 }
  0x52   : > { %703 = vmatpush3.xpose.msk.msra.mxu0 %vm318_vm1, %v315_v1  ;;  %708 = vmatpush3.msra.mxu1 %v316_v7  ;;  %s517_s14 = sshll.u32 %s313_s9, 4  ;;  %s489_s13 = scalar_lea.sflag [#allocation10], %s1165_s24  ;;  %s518_s14 = int_to_ptr.vmem [resolvable:$true] %s517_s14 }
  0x53   : > { %s879_s25 = scalar_lea.vmem %s518_s14, 128  ;;  %s1000_s29 = smov [#allocation9]  }
  0x54   : > { %p880_p8 = scmp.ne.s32.totalorder %s518_s14, %s879_s25  ;;  %s883_s10 = sshll.u32 %s1000_s29, 4  ;;  %s884_s10 = int_to_ptr.vmem [resolvable:$false] %s883_s10 }
  0x55   : > { %705 = vmatmul.mubr.msk.f32.vlgmr.msra.gmra.mxu0 %vm318_vm1, %v317_v3  ;;  %s885_s19 = scalar_lea.vmem %s884_s10, 256  ;;  %p886_p3 = scmp.lt.s32.totalorder %s518_s14, %s884_s10 }
  0x56   : > { %p881_p13 = pnand %p880_p8, %p1082_p9  ;;  %p887_p10 = scmp.lt.s32.totalorder %s885_s19, %s879_s25 }
  0x58   : > { %p882_p2 = pneg %p881_p13  ;;  %p888_p12 = por %p887_p10, %p886_p3 }
  0x5a   : > { %p889_p4 = pnand %p888_p12, %p882_p2 }
 0x115   : > { %v391_v4 = vpop.f32.mrf.mxu0 }
 0x116   : > { %v396_v5 = vsel %vm395_vm2, %v391_v4, -inf }
 0x117   : > { %397 = vmax.xlane.f32.xlu0 %v396_v5  ;;  %v706_v6 = vpop.f32.mrf.mxu0 }
 0x1a0   : > { %v398_v8 = vpop.xlane.xlu0 %397 }
 0x1a1   : > { %v399_v9 = vsub.f32 %v391_v4, %v398_v8 }
 0x1a3   : > { %v400_v10 = vmul.f32 1.442695, %v399_v9 }
 0x1a5   : > { %791 = vpow2.f32 %v400_v10 }
 0x1b2   : > { %v792_v11 = vpop.eup %791 }
 0x1b3   : > { %710 = vmatmul.mubr.msk.f32.vlgmr.msra.gmra.mxu1 %vm395_vm2, %v792_v11  ;;  %v402_v12 = vsel %vm395_vm2, %v792_v11, 0.0 }
 0x1b4   : > { %403 = vadd.xlane.f32.xlu0 %v402_v12 }
 0x23d   : > { %v404_v13 = vpop.xlane.xlu0 %403 }
 0x23e   : > { %793 = vrcp.f32 %v404_v13 }
 0x24b   : > { %v794_v14 = vpop.eup %793 }
 0x24c   : > { %v481_v15 = vmul.f32 %v794_v14, %v792_v11 }
 0x24e   : > { %482 = vst.msk [vmem:[%s313_s9] sm:$0xff] %vm395_vm2, %v481_v15 }
 0x24f   : > { %892 = shalt.err (!%p889_p4)
}
 0x250   : > { %s893_s6 = scalar_lea.hbm %s515_s5, 128  ;;  %s897_s1 = scalar_lea.hbm %s1261_s4, 512 }
 0x251   : > { %p894_p0 = scmp.ne.s32.totalorder %s515_s5, %s893_s6  ;;  %p898_p6 = scmp.lt.s32.totalorder %s515_s5, %s1261_s4 }
 0x252   : > { %p899_p7 = scmp.lt.s32.totalorder %s897_s1, %s893_s6 }
 0x253   : > { %p895_p1 = pnand %p894_p0, %p1082_p9 }
 0x254   : > { %p900_p8 = por %p899_p7, %p898_p6 }
 0x255   : > { %p896_p5 = pneg %p895_p1 }
 0x257   : > { %p901_p13 = pnand %p900_p8, %p896_p5 }
 0x259   : > { %904 = shalt.err (!%p901_p13)
}
 0x25a   : > { %719 = dma.vmem_to_hbm [thread:$0]  (%p1082_p9), %s518_s14, 128, %s515_s5, %s489_s13  }
 0x25b   : > { %s306_s21 = scalar_lea.vmem [#allocation8], %s1168_s26  ;;  %s1215_s25 = scalar_lea.hbm %s1260_s3, %s694_s27 }
 0x25c   : > { %s503_s9 = sshll.u32 %s306_s21, 4  ;;  %s484_s29 = scalar_lea.sflag [#allocation4], %s1165_s24  ;;  %s504_s9 = int_to_ptr.vmem [resolvable:$true] %s503_s9 }
 0x25d   : > { %s905_s10 = scalar_lea.vmem %s504_s9, 128  ;;  %s1001_s26 = smov [#allocation8]  }
 0x25e   : > { %p906_p2 = scmp.ne.s32.totalorder %s504_s9, %s905_s10  ;;  %s909_s14 = sshll.u32 %s1001_s26, 4  ;;  %s910_s14 = int_to_ptr.vmem [resolvable:$false] %s909_s14 }
 0x25f   : > { %s911_s5 = scalar_lea.vmem %s910_s14, 256  ;;  %p912_p12 = scmp.lt.s32.totalorder %s504_s9, %s910_s14 }
 0x260   : > { %p907_p3 = pnand %p906_p2, %p1082_p9  ;;  %p913_p4 = scmp.lt.s32.totalorder %s911_s5, %s905_s10 }
 0x262   : > { %p908_p10 = pneg %p907_p3  ;;  %p914_p0 = por %p913_p4, %p912_p12 }
 0x264   : > { %p915_p1 = pnand %p914_p0, %p908_p10 }
 0x273   : > { %v475_v16 = vpop.f32.mrf.mxu1 }
 0x274   : > { %v479_v17 = vmul.f32 %v794_v14, %v475_v16 }
 0x275   : > { %v711_v18 = vpop.f32.mrf.mxu1 }
 0x276   : > { %480 = vst.msk [vmem:[%s306_s21] sm:$0xff] %vm318_vm1, %v479_v17 }
 0x277   : > { %918 = shalt.err (!%p915_p1)
}
 0x278   : > { %s919_s18 = scalar_lea.hbm %s1215_s25, 128  ;;  %s923_s13 = scalar_lea.hbm %s1260_s3, 512 }
 0x279   : > { %p920_p5 = scmp.ne.s32.totalorder %s1215_s25, %s919_s18  ;;  %p924_p8 = scmp.lt.s32.totalorder %s1215_s25, %s1260_s3 }
 0x27a   : > { %p925_p13 = scmp.lt.s32.totalorder %s923_s13, %s919_s18 }
 0x27b   : > { %p921_p6 = pnand %p920_p5, %p1082_p9 }
 0x27c   : > { %p926_p2 = por %p925_p13, %p924_p8 }
 0x27d   : > { %p922_p7 = pneg %p921_p6 }
 0x27f   : > { %p927_p3 = pnand %p926_p2, %p922_p7 }
 0x281   : > { %930 = shalt.err (!%p927_p3)
}
 0x282   : > { %718 = dma.vmem_to_hbm [thread:$0]  (%p1082_p9), %s504_s9, 128, %s1215_s25, %s484_s29  }
 0x283 PF: > { %p740_p10 = scmp.ge.s32.totalorder %s993_s20, 2  ;;  %s529_s8 = sand.u32 1, %s973_s15  }
 0x284   : > { %s530_s12 = scalar_lea.sflag [#allocation4], %s529_s8 }
 0x285   : > { %p733_p12 = pnand %p740_p10, %p1089_p11 }
 0x287   : > { %p734_p4 = pneg %p733_p12 }
 0x289   : > { %964 = dma.done.wait (%p734_p4), %s530_s12, 128  }
 0x28a   : > { %966 = vsyncadd (%p734_p4), %s530_s12, 4294967168  ;;  %s539_s1 = scalar_lea.sflag [#allocation10], %s529_s8 }
 0x28b   : > { %968 = dma.done.wait (%p734_p4), %s539_s1, 128  }
 0x28c   : > { %970 = vsyncadd (%p734_p4), %s539_s1, 4294967168  ;;  %s27_s20 = sadd.s32 1, %s993_s20   ;;  %s1277_s28 = sld [smem:[#allocation17_spill]] }
 0x28d   : > { %p24_p0 = scmp.ge.s32.totalorder %s27_s20, 6   ;;  %s1278_s18 = sld [smem:[#allocation15_spill]] }
 0x28e   : > { %s1279_s19 = sld [smem:[#allocation16_spill]]  ;;  %s1280_s15 = smov %s977_s16 }
 0x28f   : > { %s1281_s16 = smov %s981_s17  ;;  %26 = sbr.rel (!%p24_p0) target bundleno = 12 (0xc), region = 118 }
 0x292   : > { %s1282_s17 = smov %s1277_s28 }
 0x294   :  { %544 = vsyncpa [#allocation3], 1 }
 0x295   :  { %546 = vsyncpa [#allocation3 + $0x1], 1 }
 0x296   :  { %547 = vsyncpa [#allocation6], 1 }
 0x297   :  { %549 = vsyncpa [#allocation6 + $0x1], 1 }
 0x298   :  { %550 = vsyncpa [#allocation4], 1 }
 0x299   :  { %552 = vsyncpa [#allocation4 + $0x1], 1 }
 0x29a   :  { %553 = vsyncpa [#allocation10], 1 }
 0x29b   :  { %555 = vsyncpa [#allocation10 + $0x1], 1 }

</bundles_post_ra>
